<compile_context>
chip_gen: v5e
topology: v5e:2x2
jax: 0.10.0
libtpu: 0.0.40
codegen_flags: <defaults>
</compile_context>

<pallas_src>
import functools

import jax
import jax.numpy as jnp
from jax.experimental import pallas as pl
from jax.experimental.pallas import tpu as pltpu

_LANE = 128
_MAX_BATCH_TILE = 512  # rows per grid step; enough to fill the MXU without VMEM pressure
_ACTS = ("relu", "tanh", "sigmoid", "selu", "elu")


def _round_up(x, m):
    return (x + m - 1) // m * m


def _vmem_cap_bytes():
    """Upper bound we are willing to request for scoped VMEM."""
    try:
        kind = jax.devices()[0].device_kind.lower()
    except Exception:
        kind = ""
    if "v7" in kind:  # 64 MiB physical per TC: leave headroom for Mosaic scratch
        return 48 * 1024 * 1024
    return 64 * 1024 * 1024  # v5e/v6e: 128 MiB physical


def _apply_act(y, act):
    if act == "relu":
        return jnp.maximum(y, 0.0)
    if act == "tanh":
        return jnp.tanh(y)
    if act == "sigmoid":
        return jax.nn.sigmoid(y)
    if act == "selu":
        return jax.nn.selu(y)
    if act == "elu":
        return jax.nn.elu(y)
    raise ValueError(f"unknown activation {act!r}")


def _mlp_fused_kernel(*refs, n_layers, act):
    """Whole MLP on one batch tile.

    refs = (x_ref, w0, b0, w1, b1, ..., w_{n-1}, b_{n-1}, o_ref)

      x_ref : (TB, D0)         compute dtype (bf16), VMEM -- D0 unpadded
      w_i   : (P_i, P_{i+1})   compute dtype, VMEM (lane-padded, zero-filled)
      b_i   : (1, P_{i+1})     f32, VMEM
      o_ref : (TB, P_last)     out dtype, VMEM (lane-dense)

    Intermediate activations never leave on-chip memory.
    """
    x_ref = refs[0]
    o_ref = refs[1 + 2 * n_layers]
    h = x_ref[...]
    for i in range(n_layers):
        w = refs[1 + 2 * i][...]
        b = refs[2 + 2 * i][...]
        # MXU matmul with bf16 operands, f32 accumulation.
        y = jnp.dot(h.astype(w.dtype), w, preferred_element_type=jnp.float32)
        y = y + b.astype(jnp.float32)
        if i < n_layers - 1:
            y = _apply_act(y, act)  # f32 on the VPU/EUP
            # TODO(synk): dropout(p > 0) masking would go here via pltpu.prng_*.
        h = y
    o_ref[...] = h.astype(o_ref.dtype)


class BaseMLP:
    """JAX/Pallas equivalent of the PyTorch `_Base` module (inference)."""

    def __init__(self, layers, dropout=0.0, act="relu", key=None,
                 compute_dtype=jnp.bfloat16, out_dtype=jnp.float32):
        assert dropout == 0.0, "only inference / dropout=0.0 is implemented"
        self.layers = tuple(int(d) for d in layers)
        self.act = act.lower()
        if self.act not in _ACTS:
            raise ValueError(f"unknown activation {act!r}")
        self.compute_dtype = compute_dtype
        self.out_dtype = out_dtype
        if key is None:
            key = jax.random.PRNGKey(0)

        # Input feature dim stays unpadded (block last dim == full array dim is legal);
        # hidden/output dims are padded to multiples of 128 for lane-dense matmuls/stores.
        self.padded_dims = (self.layers[0],) + tuple(
            _round_up(d, _LANE) for d in self.layers[1:])

        self.params = []         # unpadded f32 params (reference path)
        self.padded_params = []  # lane-padded W (compute dtype) + f32 bias (kernel path)
        for i in range(len(self.layers) - 1):
            d_in, d_out = self.layers[i], self.layers[i + 1]
            p_in, p_out = self.padded_dims[i], self.padded_dims[i + 1]
            key, kw, kb = jax.random.split(key, 3)
            # PyTorch nn.Linear default init: U(-1/sqrt(d_in), 1/sqrt(d_in)).
            bound = 1.0 / (d_in ** 0.5)
            w = jax.random.uniform(kw, (d_in, d_out), jnp.float32, -bound, bound)
            b = jax.random.uniform(kb, (1, d_out), jnp.float32, -bound, bound)
            self.params.append((w, b))
            # Zero padding keeps results exact: padded weight ROWS are zero, so padded
            # activation columns (e.g. sigmoid -> 0.5) never influence real outputs.
            w_pad = jnp.zeros((p_in, p_out), jnp.float32).at[:d_in, :d_out].set(w)
            b_pad = jnp.zeros((1, p_out), jnp.float32).at[:, :d_out].set(b)
            self.padded_params.append((w_pad.astype(self.compute_dtype), b_pad))

        # Jit the whole forward path; params are traced args (not baked-in constants).
        self._jit_forward = jax.jit(self._forward)

    def _forward(self, x, *flat_params):
        B, d0 = x.shape
        n = len(self.layers) - 1
        p_last = self.padded_dims[-1]
        c_dt = self.compute_dtype
        c_item = jnp.dtype(c_dt).itemsize
        o_item = jnp.dtype(self.out_dtype).itemsize

        # One large batch tile; no forced split for small batches (grid steps cost
        # ~600 cycles each and a tiny LHS underfills the MXU).  block_b == B is legal
        # for any B (block dim equal to full array dim); otherwise 512 is a multiple of 8.
        block_b = B if B <= _MAX_BATCH_TILE else _MAX_BATCH_TILE
        grid = (pl.cdiv(B, block_b),)

        x_c = x.astype(c_dt)

        in_specs = [pl.BlockSpec((block_b, d0), lambda i: (i, 0))]
        args = [x_c]
        weight_bytes = 0
        for li in range(n):
            w = flat_params[2 * li]
            b = flat_params[2 * li + 1]
            p_in, p_out = self.padded_dims[li], self.padded_dims[li + 1]
            in_specs.append(pl.BlockSpec((p_in, p_out), lambda i: (0, 0)))
            in_specs.append(pl.BlockSpec((1, p_out), lambda i: (0, 0)))
            args.append(w)
            args.append(b)
            weight_bytes += int(w.size) * c_item + int(b.size) * 4

        # Advisory cost hint for XLA scheduling around the custom call.
        flops = 2 * B * sum(self.padded_dims[i] * self.padded_dims[i + 1]
                            for i in range(n))
        transcendentals = 0 if self.act == "relu" else B * sum(self.padded_dims[1:-1])
        bytes_accessed = B * d0 * c_item + weight_bytes + B * p_last * o_item
        cost = pl.CostEstimate(flops=int(flops),
                               transcendentals=int(transcendentals),
                               bytes_accessed=int(bytes_accessed))

        # Computed VMEM budget (double-buffered x/out blocks + weights), capped per-chip.
        needed = (2 * block_b * d0 * c_item
                  + 2 * block_b * p_last * o_item
                  + 2 * weight_bytes)
        vmem_limit = int(min(_vmem_cap_bytes(), max(32 << 20, 2 * needed + (2 << 20))))

        out = pl.pallas_call(
            functools.partial(_mlp_fused_kernel, n_layers=n, act=self.act),
            out_shape=jax.ShapeDtypeStruct((B, p_last), self.out_dtype),
            grid_spec=pltpu.PrefetchScalarGridSpec(
                num_scalar_prefetch=0,
                grid=grid,
                in_specs=in_specs,
                out_specs=pl.BlockSpec((block_b, p_last), lambda i: (i, 0)),
            ),
            compiler_params=pltpu.CompilerParams(
                dimension_semantics=("parallel",),
                vmem_limit_bytes=vmem_limit,
            ),
            cost_estimate=cost,
        )(*args)
        # Strip lane padding back to the logical output width (fused under jit).
        return out[:, : self.layers[-1]]

    def __call__(self, x):
        flat = [p for wb in self.padded_params for p in wb]
        return self._jit_forward(x, *flat)

    def reference(self, x):
        """Pure-JAX f32 reference for correctness checking."""
        fn = {
            "relu": jax.nn.relu,
            "tanh": jnp.tanh,
            "sigmoid": jax.nn.sigmoid,
            "selu": jax.nn.selu,
            "elu": jax.nn.elu,
        }[self.act]
        n = len(self.params)
        h = x
        for i, (w, b) in enumerate(self.params):
            h = h @ w + b
            if i < n - 1:
                h = fn(h)
        return h


if __name__ == "__main__":
    key = jax.random.PRNGKey(0)
    k_x, k_p = jax.random.split(key)

    # Small MLP consistent with the module: _Base(layers=[32, 64, 48, 16])
    layers = [32, 64, 48, 16]
    batch = 64  # single grid step of 64 rows; no host-side padding of x

    model = BaseMLP(layers, dropout=0.0, act="relu", key=k_p)
    x = jax.random.normal(k_x, (batch, layers[0]), dtype=jnp.float32)

    out = jax.block_until_ready(model(x))
    ref = model.reference(x)

    assert out.shape == (batch, layers[-1])
    out_f32 = out.astype(jnp.float32)
    err = float(jnp.max(jnp.abs(out_f32 - ref)))
    assert jnp.allclose(out_f32, ref, atol=5e-2, rtol=5e-2), f"max abs err = {err}"

    print("KERNEL_OK")
</pallas_src>

<mosaic_0001>
module attributes {stable_mosaic.version = 11 : i64} {
  func.func @_mlp_fused_kernel(%arg0: i32, %arg1: memref<64x32xbf16, #tpu.memory_space<vmem>>, %arg2: memref<32x128xbf16, #tpu.memory_space<vmem>>, %arg3: memref<1x128xf32, #tpu.memory_space<vmem>>, %arg4: memref<128x128xbf16, #tpu.memory_space<vmem>>, %arg5: memref<1x128xf32, #tpu.memory_space<vmem>>, %arg6: memref<128x128xbf16, #tpu.memory_space<vmem>>, %arg7: memref<1x128xf32, #tpu.memory_space<vmem>>, %arg8: memref<64x128xf32, #tpu.memory_space<vmem>>) attributes {dimension_semantics = [#tpu.dimension_semantics<parallel>], iteration_bounds = array<i64: 1>, scalar_prefetch = 0 : i64, scratch_operands = 0 : i64, tpu.core_type = #tpu.core_type<tc>, window_params = [{transform_indices = @transform_0, window_bounds = array<i64: 64, 32>}, {pipeline_mode = #tpu.pipeline_mode<synchronous>, transform_indices = @transform_1, window_bounds = array<i64: 32, 128>}, {pipeline_mode = #tpu.pipeline_mode<synchronous>, transform_indices = @transform_2, window_bounds = array<i64: 1, 128>}, {pipeline_mode = #tpu.pipeline_mode<synchronous>, transform_indices = @transform_3, window_bounds = array<i64: 128, 128>}, {pipeline_mode = #tpu.pipeline_mode<synchronous>, transform_indices = @transform_4, window_bounds = array<i64: 1, 128>}, {pipeline_mode = #tpu.pipeline_mode<synchronous>, transform_indices = @transform_5, window_bounds = array<i64: 128, 128>}, {pipeline_mode = #tpu.pipeline_mode<synchronous>, transform_indices = @transform_6, window_bounds = array<i64: 1, 128>}, {transform_indices = @transform_7, window_bounds = array<i64: 64, 128>}]} {
    %c0 = arith.constant 0 : index
    %c0_0 = arith.constant 0 : index
    %0 = vector.load %arg1[%c0, %c0_0] : memref<64x32xbf16, #tpu.memory_space<vmem>>, vector<64x32xbf16>
    %c0_1 = arith.constant 0 : index
    %c0_2 = arith.constant 0 : index
    %1 = vector.load %arg2[%c0_1, %c0_2] : memref<32x128xbf16, #tpu.memory_space<vmem>>, vector<32x128xbf16>
    %c0_3 = arith.constant 0 : index
    %c0_4 = arith.constant 0 : index
    %2 = vector.load %arg3[%c0_3, %c0_4] : memref<1x128xf32, #tpu.memory_space<vmem>>, vector<1x128xf32>
    %cst = arith.constant dense<0.000000e+00> : vector<64x128xf32>
    %3 = tpu.matmul %0, %1, %cst {dimension_numbers = #tpu.dot_dimension_numbers<[1], [0], [0], [1], [0, 0, 1, 1], [], []>} : vector<64x32xbf16>, vector<32x128xbf16>, vector<64x128xf32> -> vector<64x128xf32>
    %4 = vector.broadcast %2 : vector<1x128xf32> to vector<64x128xf32>
    %5 = arith.addf %3, %4 : vector<64x128xf32>
    %cst_5 = arith.constant 0.000000e+00 : f32
    %6 = vector.broadcast %cst_5 : f32 to vector<64x128xf32>
    %7 = arith.maximumf %5, %6 : vector<64x128xf32>
    %c0_6 = arith.constant 0 : index
    %c0_7 = arith.constant 0 : index
    %8 = vector.load %arg4[%c0_6, %c0_7] : memref<128x128xbf16, #tpu.memory_space<vmem>>, vector<128x128xbf16>
    %c0_8 = arith.constant 0 : index
    %c0_9 = arith.constant 0 : index
    %9 = vector.load %arg5[%c0_8, %c0_9] : memref<1x128xf32, #tpu.memory_space<vmem>>, vector<1x128xf32>
    %10 = arith.truncf %7 : vector<64x128xf32> to vector<64x128xbf16>
    %cst_10 = arith.constant dense<0.000000e+00> : vector<64x128xf32>
    %11 = tpu.matmul %10, %8, %cst_10 {dimension_numbers = #tpu.dot_dimension_numbers<[1], [0], [0], [1], [0, 0, 1, 1], [], []>} : vector<64x128xbf16>, vector<128x128xbf16>, vector<64x128xf32> -> vector<64x128xf32>
    %12 = vector.broadcast %9 : vector<1x128xf32> to vector<64x128xf32>
    %13 = arith.addf %11, %12 : vector<64x128xf32>
    %cst_11 = arith.constant 0.000000e+00 : f32
    %14 = vector.broadcast %cst_11 : f32 to vector<64x128xf32>
    %15 = arith.maximumf %13, %14 : vector<64x128xf32>
    %c0_12 = arith.constant 0 : index
    %c0_13 = arith.constant 0 : index
    %16 = vector.load %arg6[%c0_12, %c0_13] : memref<128x128xbf16, #tpu.memory_space<vmem>>, vector<128x128xbf16>
    %c0_14 = arith.constant 0 : index
    %c0_15 = arith.constant 0 : index
    %17 = vector.load %arg7[%c0_14, %c0_15] : memref<1x128xf32, #tpu.memory_space<vmem>>, vector<1x128xf32>
    %18 = arith.truncf %15 : vector<64x128xf32> to vector<64x128xbf16>
    %cst_16 = arith.constant dense<0.000000e+00> : vector<64x128xf32>
    %19 = tpu.matmul %18, %16, %cst_16 {dimension_numbers = #tpu.dot_dimension_numbers<[1], [0], [0], [1], [0, 0, 1, 1], [], []>} : vector<64x128xbf16>, vector<128x128xbf16>, vector<64x128xf32> -> vector<64x128xf32>
    %20 = vector.broadcast %17 : vector<1x128xf32> to vector<64x128xf32>
    %21 = arith.addf %19, %20 : vector<64x128xf32>
    %c0_17 = arith.constant 0 : index
    %c0_18 = arith.constant 0 : index
    %22 = vector.load %arg8[%c0_17, %c0_18] : memref<64x128xf32, #tpu.memory_space<vmem>>, vector<64x128xf32>
    tpu.vector_store %arg8[%c0_17, %c0_18], %21 {strides = array<i32>} : memref<64x128xf32, #tpu.memory_space<vmem>>, vector<64x128xf32>,
    return
  }
  func.func @transform_0(%arg0: i32) -> (i32, i32) {
    %c0_i32 = arith.constant 0 : i32
    %c0_i32_0 = arith.constant 0 : i32
    return %arg0, %c0_i32 : i32, i32
  }
  func.func @transform_1(%arg0: i32) -> (i32, i32) {
    %c0_i32 = arith.constant 0 : i32
    %c0_i32_0 = arith.constant 0 : i32
    %c0_i32_1 = arith.constant 0 : i32
    return %c0_i32, %c0_i32_0 : i32, i32
  }
  func.func @transform_2(%arg0: i32) -> (i32, i32) {
    %c0_i32 = arith.constant 0 : i32
    %c0_i32_0 = arith.constant 0 : i32
    %c0_i32_1 = arith.constant 0 : i32
    return %c0_i32, %c0_i32_0 : i32, i32
  }
  func.func @transform_3(%arg0: i32) -> (i32, i32) {
    %c0_i32 = arith.constant 0 : i32
    %c0_i32_0 = arith.constant 0 : i32
    %c0_i32_1 = arith.constant 0 : i32
    return %c0_i32, %c0_i32_0 : i32, i32
  }
  func.func @transform_4(%arg0: i32) -> (i32, i32) {
    %c0_i32 = arith.constant 0 : i32
    %c0_i32_0 = arith.constant 0 : i32
    %c0_i32_1 = arith.constant 0 : i32
    return %c0_i32, %c0_i32_0 : i32, i32
  }
  func.func @transform_5(%arg0: i32) -> (i32, i32) {
    %c0_i32 = arith.constant 0 : i32
    %c0_i32_0 = arith.constant 0 : i32
    %c0_i32_1 = arith.constant 0 : i32
    return %c0_i32, %c0_i32_0 : i32, i32
  }
  func.func @transform_6(%arg0: i32) -> (i32, i32) {
    %c0_i32 = arith.constant 0 : i32
    %c0_i32_0 = arith.constant 0 : i32
    %c0_i32_1 = arith.constant 0 : i32
    return %c0_i32, %c0_i32_0 : i32, i32
  }
  func.func @transform_7(%arg0: i32) -> (i32, i32) {
    %c0_i32 = arith.constant 0 : i32
    %c0_i32_0 = arith.constant 0 : i32
    return %arg0, %c0_i32 : i32, i32
  }
}

</mosaic_0001>

<bundles_post_ra>
// kernel: _forward.1
= control target key start
LH: loop header
LB: loop body
LE: loop exit
PB: predicated region body
PF: predicated region fallthrough
CT: control target
= control target key end

     0   :  { %12 = vsyncpa [#allocation3], 0  ;;  %s526_s27 = smov [#allocation2]   ;;  %s527_s29 = smov 64   ;;  %s651_s0 = inlined_call_operand.vmem [shape: bf16[64,32], index: 0, kind: input, shape index: {}]   ;;  %s652_s1 = inlined_call_operand.vmem [shape: bf16[32,128], index: 1, kind: input, shape index: {}]   ;;  %s653_s2 = inlined_call_operand.vmem [shape: f32[1,128], index: 2, kind: input, shape index: {}]   ;;  %s654_s3 = inlined_call_operand.vmem [shape: bf16[128,128], index: 3, kind: input, shape index: {}]   ;;  %s655_s4 = inlined_call_operand.vmem [shape: f32[1,128], index: 4, kind: input, shape index: {}]   ;;  %s656_s5 = inlined_call_operand.hbm [shape: bf16[128,128], index: 5, kind: input, shape index: {}]   ;;  %s657_s6 = inlined_call_operand.vmem [shape: f32[1,128], index: 6, kind: input, shape index: {}]   ;;  %s658_s7 = inlined_call_operand.vmem [shape: f32[64,128], index: 7, kind: output, shape index: {}]  }
   0x1   :  { %s27_s26 = sshll.u32 %s656_s5, 4  ;;  %s29_s28 = sshll.u32 %s526_s27, 4  ;;  %s28_s26 = int_to_ptr.hbm [resolvable:$true] %s27_s26  ;;  %s30_s28 = int_to_ptr.vmem [resolvable:$true] %s29_s28 }
   0x2   :  { %s528_s30 = smov 4  }
   0x3   :  { %35 = dma.hbm_to_vmem [thread:$0]  %s28_s26, 1024, %s30_s28, [#allocation3], %s527_s29, %s527_s29, %s528_s30  }
   0x4   :  { %524 = dma.done.wait [#allocation3], 1024  }
   0x5   :  { %525 = vsyncadd [#allocation3], 4294966272  ;;  %v461_v0 = vld [vmem:[%s652_s1 + $0x8] sm:$0xff]  ;;  %v460_v1 = vld [vmem:[%s652_s1] sm:$0xff]  ;;  %vm91_vm0 = vcmask 261120  }
   0x6   :  { %110 = vmatpush.bf16.msra.mxu0 %v461_v0  ;;  %v456_v2 = vld [vmem:[%s651_s0] sm:$0xff]  ;;  %v457_v3 = vld [vmem:[%s651_s0 + $0x8] sm:$0xff]  ;;  %v469_v4 = vld [vmem:[%s654_s3 + $0x38] sm:$0xff] }
   0x7   :  { %213 = vmatpush.bf16.msra.mxu1 %v469_v4  ;;  %v468_v5 = vld [vmem:[%s654_s3 + $0x30] sm:$0xff]  ;;  %478 = vmatpush.bf16.msra.mxu3 %v469_v4  ;;  %v467_v6 = vld [vmem:[%s654_s3 + $0x28] sm:$0xff]  ;;  %v466_v7 = vld [vmem:[%s654_s3 + $0x20] sm:$0xff] }
   0x8   :  { %v458_v8 = vld [vmem:[%s651_s0 + $0x10] sm:$0xff]  ;;  %v459_v9 = vld [vmem:[%s651_s0 + $0x18] sm:$0xff]  ;;  %v463_v12 = vld [vmem:[%s654_s3 + $0x8] sm:$0xff] }
   0x9   :  { %v465_v10 = vld [vmem:[%s654_s3 + $0x18] sm:$0xff]  ;;  %v464_v11 = vld [vmem:[%s654_s3 + $0x10] sm:$0xff]  ;;  %v462_v13 = vld [vmem:[%s654_s3] sm:$0xff] }
   0xa   :  { %111 = vmatpush.bf16.msra.mxu0 %v460_v1  ;;  %v497_v15 = vld [vmem:[%s653_s2] ss:$0 sm:$0xff]  ;;  %v477_v29 = vld [vmem:[#allocation2 + $0x38] sm:$0xff]  ;;  %v476_v31 = vld [vmem:[#allocation2 + $0x30] sm:$0xff] }
   0xb   :  { %214 = vmatpush.bf16.msra.mxu1 %v468_v5  ;;  %479 = vmatpush.bf16.msra.mxu3 %v468_v5  ;;  %v475_v32 = vld [vmem:[#allocation2 + $0x28] sm:$0xff]  ;;  %v474_v36 = vld [vmem:[#allocation2 + $0x20] sm:$0xff]  ;;  %v473_v47 = vld [vmem:[#allocation2 + $0x18] sm:$0xff] }
   0xc   :  { %486 = vmatpush.bf16.msra.mxu2 %v477_v29  ;;  %v472_v48 = vld [vmem:[#allocation2 + $0x10] sm:$0xff]  ;;  %v471_v49 = vld [vmem:[#allocation2 + $0x8] sm:$0xff]  ;;  %v470_v50 = vld [vmem:[#allocation2] sm:$0xff] }
   0xd   :  { %388 = vmatmul.msk.bf16.vlgmr.msra.gmra.mxu0 %vm91_vm0, %v456_v2  ;;  %v498_v52 = vld [vmem:[%s655_s4] ss:$0 sm:$0xff] }
   0xf   :  { %215 = vmatpush.bf16.msra.mxu1 %v467_v6  ;;  %480 = vmatpush.bf16.msra.mxu3 %v467_v6 }
  0x10   :  { %487 = vmatpush.bf16.msra.mxu2 %v476_v31 }
  0x13   :  { %216 = vmatpush.bf16.msra.mxu1 %v466_v7  ;;  %481 = vmatpush.bf16.msra.mxu3 %v466_v7 }
  0x14   :  { %488 = vmatpush.bf16.msra.mxu2 %v475_v32 }
  0x17   :  { %217 = vmatpush.bf16.msra.mxu1 %v465_v10  ;;  %482 = vmatpush.bf16.msra.mxu3 %v465_v10 }
  0x18   :  { %489 = vmatpush.bf16.msra.mxu2 %v474_v36 }
  0x1b   :  { %218 = vmatpush.bf16.msra.mxu1 %v464_v11  ;;  %483 = vmatpush.bf16.msra.mxu3 %v464_v11 }
  0x1c   :  { %490 = vmatpush.bf16.msra.mxu2 %v473_v47 }
  0x1d   :  { %389 = vmatmul.msk.bf16.gmra.mxu0 %vm91_vm0, %v457_v3 }
  0x1f   :  { %219 = vmatpush.bf16.msra.mxu1 %v463_v12  ;;  %484 = vmatpush.bf16.msra.mxu3 %v463_v12 }
  0x20   :  { %491 = vmatpush.bf16.msra.mxu2 %v472_v48 }
  0x23   :  { %220 = vmatpush.bf16.msra.mxu1 %v462_v13  ;;  %485 = vmatpush.bf16.msra.mxu3 %v462_v13 }
  0x24   :  { %492 = vmatpush.bf16.msra.mxu2 %v471_v49 }
  0x27   :  { %322 = vmatpush.bf16.msrb.mxu1 %v477_v29 }
  0x28   :  { %493 = vmatpush.bf16.msra.mxu2 %v470_v50 }
  0x2b   :  { %323 = vmatpush.bf16.msrb.mxu1 %v476_v31 }
  0x2d   :  { %390 = vmatmul.msk.bf16.gmra.mxu0 %vm91_vm0, %v458_v8 }
  0x2f   :  { %324 = vmatpush.bf16.msrb.mxu1 %v475_v32 }
  0x33   :  { %325 = vmatpush.bf16.msrb.mxu1 %v474_v36 }
  0x37   :  { %326 = vmatpush.bf16.msrb.mxu1 %v473_v47 }
  0x3b   :  { %327 = vmatpush.bf16.msrb.mxu1 %v472_v48 }
  0x3d   :  { %391 = vmatmul.msk.bf16.gmra.mxu0 %vm91_vm0, %v459_v9 }
  0x3f   :  { %328 = vmatpush.bf16.msrb.mxu1 %v471_v49 }
  0x43   :  { %329 = vmatpush.bf16.msrb.mxu1 %v470_v50 }
  0x8a   :  { %v113_v14 = vpop.f32.mrf.mxu0 }
  0x8b   :  { %v114_v16 = vadd.f32 %v497_v15, %v113_v14 }
  0x8d   :  { %v133_v19 = vmax.f32 %v114_v16, 0.0  ;;  %v499_v16 = vld [vmem:[%s657_s6] ss:$0 sm:$0xff] }
  0x92   :  { %v115_v17 = vpop.f32.mrf.mxu0 }
  0x93   :  { %v116_v18 = vadd.f32 %v497_v15, %v115_v17 }
  0x95   :  { %v134_v20 = vmax.f32 %v116_v18, 0.0 }
  0x97   :  { %v158_v21 = vpack.c.bf16 %v134_v20, %v133_v19 }
  0x99   :  { %221 = vmatmul.bf16.vlgmr.msra.gmra.mxu1 %v158_v21 }
  0x9a   :  { %v118_v22 = vpop.f32.mrf.mxu0 }
  0x9b   :  { %v119_v23 = vadd.f32 %v497_v15, %v118_v22 }
  0x9d   :  { %v135_v26 = vmax.f32 %v119_v23, 0.0 }
  0xa2   :  { %v120_v24 = vpop.f32.mrf.mxu0 }
  0xa3   :  { %v121_v25 = vadd.f32 %v497_v15, %v120_v24 }
  0xa5   :  { %v136_v27 = vmax.f32 %v121_v25, 0.0 }
  0xa7   :  { %v159_v28 = vpack.c.bf16 %v136_v27, %v135_v26 }
  0xa9   :  { %226 = vmatmul.bf16.vlgmr.msra.gmra.mxu3 %v159_v28 }
  0xaa   :  { %v123_v30 = vpop.f32.mrf.mxu0 }
  0xab   :  { %v124_v33 = vadd.f32 %v497_v15, %v123_v30 }
  0xad   :  { %v137_v37 = vmax.f32 %v124_v33, 0.0 }
  0xb2   :  { %v125_v34 = vpop.f32.mrf.mxu0 }
  0xb3   :  { %v126_v35 = vadd.f32 %v497_v15, %v125_v34 }
  0xb5   :  { %v138_v38 = vmax.f32 %v126_v35, 0.0 }
  0xb7   :  { %v160_v39 = vpack.c.bf16 %v138_v38, %v137_v37 }
  0xb9   :  { %231 = vmatmul.bf16.gmra.mxu3 %v160_v39 }
  0xba   :  { %v128_v40 = vpop.f32.mrf.mxu0 }
  0xbb   :  { %v129_v41 = vadd.f32 %v497_v15, %v128_v40 }
  0xbd   :  { %v139_v44 = vmax.f32 %v129_v41, 0.0 }
  0xc2   :  { %v130_v42 = vpop.f32.mrf.mxu0 }
  0xc3   :  { %v131_v43 = vadd.f32 %v497_v15, %v130_v42 }
  0xc5   :  { %v140_v45 = vmax.f32 %v131_v43, 0.0 }
  0xc7   :  { %v161_v46 = vpack.c.bf16 %v140_v45, %v139_v44 }
  0xc9   :  { %236 = vmatmul.bf16.gmra.mxu3 %v161_v46 }
 0x116   :  { %v222_v51 = vpop.f32.mrf.mxu1 }
 0x117   :  { %v223_v53 = vadd.f32 %v498_v52, %v222_v51 }
 0x119   :  { %v242_v56 = vmax.f32 %v223_v53, 0.0 }
 0x11e   :  { %v224_v54 = vpop.f32.mrf.mxu1 }
 0x11f   :  { %v225_v55 = vadd.f32 %v498_v52, %v224_v54 }
 0x121   :  { %v243_v57 = vmax.f32 %v225_v55, 0.0 }
 0x123   :  { %v267_v58 = vpack.c.bf16 %v243_v57, %v242_v56 }
 0x125   :  { %330 = vmatmul.bf16.vlgmr.msrb.gmra.mxu1 %v267_v58 }
 0x12c   :  { %v227_v59 = vpop.f32.mrf.mxu3 }
 0x12d   :  { %v228_v60 = vadd.f32 %v498_v52, %v227_v59 }
 0x12f   :  { %v244_v63 = vmax.f32 %v228_v60, 0.0 }
 0x134   :  { %v229_v61 = vpop.f32.mrf.mxu3 }
 0x135   :  { %v230_v62 = vadd.f32 %v498_v52, %v229_v61 }
 0x137   :  { %v245_v0 = vmax.f32 %v230_v62, 0.0 }
 0x139   :  { %v268_v1 = vpack.c.bf16 %v245_v0, %v244_v63 }
 0x13b   :  { %335 = vmatmul.bf16.vlgmr.msra.gmra.mxu2 %v268_v1 }
 0x13c   :  { %v232_v2 = vpop.f32.mrf.mxu3 }
 0x13d   :  { %v233_v3 = vadd.f32 %v498_v52, %v232_v2 }
 0x13f   :  { %v246_v6 = vmax.f32 %v233_v3, 0.0 }
 0x144   :  { %v234_v4 = vpop.f32.mrf.mxu3 }
 0x145   :  { %v235_v5 = vadd.f32 %v498_v52, %v234_v4 }
 0x147   :  { %v247_v7 = vmax.f32 %v235_v5, 0.0 }
 0x149   :  { %v269_v8 = vpack.c.bf16 %v247_v7, %v246_v6 }
 0x14b   :  { %340 = vmatmul.bf16.gmra.mxu2 %v269_v8 }
 0x14c   :  { %v237_v9 = vpop.f32.mrf.mxu3 }
 0x14d   :  { %v238_v10 = vadd.f32 %v498_v52, %v237_v9 }
 0x14f   :  { %v248_v13 = vmax.f32 %v238_v10, 0.0 }
 0x154   :  { %v239_v11 = vpop.f32.mrf.mxu3 }
 0x155   :  { %v240_v12 = vadd.f32 %v498_v52, %v239_v11 }
 0x157   :  { %v249_v14 = vmax.f32 %v240_v12, 0.0 }
 0x159   :  { %v270_v15 = vpack.c.bf16 %v249_v14, %v248_v13 }
 0x15b   :  { %345 = vmatmul.bf16.gmra.mxu2 %v270_v15 }
 0x1a2   :  { %v331_v17 = vpop.f32.mrf.mxu1 }
 0x1a3   :  { %v332_v18 = vadd.f32 %v499_v16, %v331_v17 }
 0x1a5   :  { %351 = vst [vmem:[%s658_s7] sm:$0xff] %v332_v18 }
 0x1aa   :  { %v333_v19 = vpop.f32.mrf.mxu1 }
 0x1ab   :  { %v334_v20 = vadd.f32 %v499_v16, %v333_v19 }
 0x1ad   :  { %352 = vst [vmem:[%s658_s7 + $0x8] sm:$0xff] %v334_v20 }
 0x1be   :  { %v336_v21 = vpop.f32.mrf.mxu2 }
 0x1bf   :  { %v337_v22 = vadd.f32 %v499_v16, %v336_v21 }
 0x1c1   :  { %353 = vst [vmem:[%s658_s7 + $0x10] sm:$0xff] %v337_v22 }
 0x1c6   :  { %v338_v23 = vpop.f32.mrf.mxu2 }
 0x1c7   :  { %v339_v24 = vadd.f32 %v499_v16, %v338_v23 }
 0x1c9   :  { %354 = vst [vmem:[%s658_s7 + $0x18] sm:$0xff] %v339_v24 }
 0x1ce   :  { %v341_v25 = vpop.f32.mrf.mxu2 }
 0x1cf   :  { %v342_v26 = vadd.f32 %v499_v16, %v341_v25 }
 0x1d1   :  { %355 = vst [vmem:[%s658_s7 + $0x20] sm:$0xff] %v342_v26 }
 0x1d6   :  { %v343_v27 = vpop.f32.mrf.mxu2 }
 0x1d7   :  { %v344_v28 = vadd.f32 %v499_v16, %v343_v27 }
 0x1d9   :  { %356 = vst [vmem:[%s658_s7 + $0x28] sm:$0xff] %v344_v28 }
 0x1de   :  { %v346_v29 = vpop.f32.mrf.mxu2 }
 0x1df   :  { %v347_v30 = vadd.f32 %v499_v16, %v346_v29 }
 0x1e1   :  { %357 = vst [vmem:[%s658_s7 + $0x30] sm:$0xff] %v347_v30 }
 0x1e6   :  { %v348_v31 = vpop.f32.mrf.mxu2 }
 0x1e7   :  { %v349_v32 = vadd.f32 %v499_v16, %v348_v31 }
 0x1e9   :  { %358 = vst [vmem:[%s658_s7 + $0x38] sm:$0xff] %v349_v32 }
 0x1ea   :  { %363 = vsyncpa [#allocation3], 1 }

</bundles_post_ra>
